<compile_context>
chip_gen: v7x
topology: tpu7x:2x2x1
jax: 0.10.0
libtpu: 0.0.40
codegen_flags: <defaults>
</compile_context>

<pallas_src>
import functools

import jax
import jax.numpy as jnp
from jax.experimental import pallas as pl
from jax.experimental.pallas import tpu as pltpu


# ----------------------------- helpers ------------------------------------- #

def degree_segments(L):
    """Static (start, size) slices of the order axis for each degree l in L."""
    l_min, l_max = L
    base = l_min * l_min
    return tuple((l * l - base, 2 * l + 1) for l in range(l_min, l_max + 1))


def _round_up(x, m):
    return ((x + m - 1) // m) * m


def _lane_pad(c):
    # VMEM lane (minor) dim pads to a multiple of 128.
    return _round_up(max(int(c), 1), 128)


_VMEM_TILE_BUDGET = 20 * 1024 * 1024   # per-step working set target (all buffers)
_VMEM_LIMIT_BYTES = 48 * 1024 * 1024   # < 64 MiB physical on v7x, > 32 MiB default


def _choose_tn(N, row_bytes, max_tn=1024):
    """Pick the batch tile: as big as the VMEM budget allows, multiple of 8,
    capped so the grid keeps >= 2 steps (v7x megacore) and never exceeds N."""
    tn = max(8, (int(_VMEM_TILE_BUDGET // max(row_bytes, 1)) // 8) * 8)
    tn = min(tn, max_tn)
    if N > 8:
        tn = min(tn, _round_up((N + 1) // 2, 8))   # keep >= 2 grid steps
    tn = min(tn, _round_up(N, 8))                  # never hugely over-pad tiny N
    return max(8, tn)


# ----------------------------- kernels ------------------------------------- #

def _dot_cw_kernel(x1_ref, x2_ref, o_ref, *, segments):
    # x1_ref, x2_ref: (tn, M, C)   o_ref: (tn, num_degrees * C)  (lane-dense slab)
    prod = x1_ref[...].astype(jnp.float32) * x2_ref[...].astype(jnp.float32)
    parts = [jnp.sum(prod[:, s:s + n, :], axis=1) for (s, n) in segments]
    o_ref[...] = jnp.concatenate(parts, axis=-1).astype(o_ref.dtype)


def _dot_pairwise_kernel(x1_ref, x2_ref, o_ref, *, segments):
    # x1_ref: (tn, M, C1), x2_ref: (tn, M, C2)  o_ref: (tn, num_degrees, C1, C2)
    x1 = x1_ref[...].astype(jnp.float32)
    x2 = x2_ref[...].astype(jnp.float32)
    for d, (s, n) in enumerate(segments):          # static unroll over degrees
        a = x1[:, s:s + n, :]                      # (tn, n, C1)
        b = x2[:, s:s + n, :]                      # (tn, n, C2)
        r = jnp.einsum("nmc,nmd->ncd", a, b,
                       preferred_element_type=jnp.float32)
        o_ref[:, d, :, :] = r.astype(o_ref.dtype)


# ----------------------------- wrapper -------------------------------------- #

def tensor_dot(x1, x2, L=(0, 3), channel_wise=True, *, tn=None):
    """Pallas TPU implementation of equitorch TensorDot.forward."""
    # batch broadcasting (glue, plain JAX)
    if x1.shape[0] == 1 and x2.shape[0] > 1:
        x1 = jnp.broadcast_to(x1, (x2.shape[0],) + x1.shape[1:])
    if x2.shape[0] == 1 and x1.shape[0] > 1:
        x2 = jnp.broadcast_to(x2, (x1.shape[0],) + x2.shape[1:])

    N, M, C1 = x1.shape
    _, M2, C2 = x2.shape
    assert M == M2, "x1 and x2 must have the same number of orders"
    segments = degree_segments(L)
    D = len(segments)
    assert segments[-1][0] + segments[-1][1] == M, "num_orders inconsistent with L"
    out_dtype = jnp.result_type(x1.dtype, x2.dtype)

    # ---- tile selection (VMEM-budgeted, double-buffered, lane-padded) ----
    in_itemsize = max(jnp.dtype(x1.dtype).itemsize, jnp.dtype(x2.dtype).itemsize)
    out_itemsize = jnp.dtype(out_dtype).itemsize
    in_row = 2 * 2 * M * _lane_pad(max(C1, C2)) * in_itemsize
    if channel_wise:
        assert C1 == C2, "channel_wise=True requires C1 == C2"
        out_row = 2 * _lane_pad(D * C1) * out_itemsize
    else:
        out_row = 2 * D * _round_up(C1, 8) * _lane_pad(C2) * out_itemsize
    if tn is None:
        tn = _choose_tn(N, in_row + out_row)
    tn = max(8, (int(tn) // 8) * 8)

    # ---- pad ragged batch to a tile multiple (zeros are harmless) ----
    N_pad = _round_up(N, tn)
    if N_pad != N:
        pad = [(0, N_pad - N)] + [(0, 0)] * (x1.ndim - 1)
        x1 = jnp.pad(x1, pad)
        x2 = jnp.pad(x2, pad)
    grid = (N_pad // tn,)

    in_specs = [
        pl.BlockSpec((tn, M, C1), lambda i: (i, 0, 0)),
        pl.BlockSpec((tn, M, C2), lambda i: (i, 0, 0)),
    ]

    if channel_wise:
        kernel = functools.partial(_dot_cw_kernel, segments=segments)
        out_shape = jax.ShapeDtypeStruct((N_pad, D * C1), out_dtype)
        out_spec = pl.BlockSpec((tn, D * C1), lambda i: (i, 0))
    else:
        kernel = functools.partial(_dot_pairwise_kernel, segments=segments)
        out_shape = jax.ShapeDtypeStruct((N_pad, D, C1, C2), out_dtype)
        out_spec = pl.BlockSpec((tn, D, C1, C2), lambda i: (i, 0, 0, 0))

    out = pl.pallas_call(
        kernel,
        out_shape=out_shape,
        grid_spec=pltpu.PrefetchScalarGridSpec(
            num_scalar_prefetch=0,
            grid=grid,
            in_specs=in_specs,
            out_specs=out_spec,
        ),
        compiler_params=pltpu.CompilerParams(
            dimension_semantics=("parallel",),
            vmem_limit_bytes=_VMEM_LIMIT_BYTES,
        ),
    )(x1, x2)

    if channel_wise:
        return out[:N].reshape(N, D, C1)    # free reshape of the dense slab
    return out[:N]


# --------------------------- pure-JAX reference ------------------------------ #

def tensor_dot_ref(x1, x2, L=(0, 3), channel_wise=True):
    segments = degree_segments(L)
    if channel_wise:
        prod = x1 * x2
        return jnp.stack(
            [jnp.sum(prod[:, s:s + n, :], axis=1) for (s, n) in segments], axis=1
        )
    return jnp.stack(
        [
            jnp.einsum("nmc,nmd->ncd", x1[:, s:s + n, :], x2[:, s:s + n, :])
            for (s, n) in segments
        ],
        axis=1,
    )


if __name__ == "__main__":
    # L = DegreeRange(0, 3) -> num_orders = 16, num_degrees = 4
    L = (0, 3)
    N, M, C = 32, 16, 64

    key = jax.random.PRNGKey(0)
    k1, k2, k3 = jax.random.split(key, 3)
    x1 = jax.random.normal(k1, (N, M, C), dtype=jnp.float32)
    x2 = jax.random.normal(k2, (N, M, C), dtype=jnp.float32)

    # channel_wise=True (module default)
    out_cw = jax.block_until_ready(tensor_dot(x1, x2, L, channel_wise=True))
    ref_cw = tensor_dot_ref(x1, x2, L, channel_wise=True)
    assert out_cw.shape == (N, 4, C)
    assert jnp.allclose(out_cw, ref_cw, atol=1e-5, rtol=1e-5)

    # channel_wise=False (pairwise channels)
    out_pw = jax.block_until_ready(tensor_dot(x1, x2, L, channel_wise=False))
    ref_pw = tensor_dot_ref(x1, x2, L, channel_wise=False)
    assert out_pw.shape == (N, 4, C, C)
    assert jnp.allclose(out_pw, ref_pw, atol=1e-4, rtol=1e-4)

    # ragged batch (exercises padding path) + batch-1 broadcasting
    Nr = 20
    x1r = jax.random.normal(k3, (Nr, M, C), dtype=jnp.float32)
    x2b = x2[:1]
    out_r = jax.block_until_ready(tensor_dot(x1r, x2b, L, channel_wise=True))
    ref_r = tensor_dot_ref(x1r, jnp.broadcast_to(x2b, x1r.shape), L, channel_wise=True)
    assert out_r.shape == (Nr, 4, C)
    assert jnp.allclose(out_r, ref_r, atol=1e-5, rtol=1e-5)

    print("KERNEL_OK")
</pallas_src>

<mosaic_0001>
module attributes {stable_mosaic.version = 11 : i64} {
  func.func @_dot_cw_kernel(%arg0: i32, %arg1: memref<16x16x64xf32, #tpu.memory_space<vmem>>, %arg2: memref<16x16x64xf32, #tpu.memory_space<vmem>>, %arg3: memref<16x256xf32, #tpu.memory_space<vmem>>) attributes {dimension_semantics = [#tpu.dimension_semantics<parallel>], iteration_bounds = array<i64: 2>, scalar_prefetch = 0 : i64, scratch_operands = 0 : i64, tpu.core_type = #tpu.core_type<tc>, window_params = [{transform_indices = @transform_0, window_bounds = array<i64: 16, 16, 64>}, {transform_indices = @transform_1, window_bounds = array<i64: 16, 16, 64>}, {transform_indices = @transform_2, window_bounds = array<i64: 16, 256>}]} {
    %c0 = arith.constant 0 : index
    %c0_0 = arith.constant 0 : index
    %c0_1 = arith.constant 0 : index
    %0 = vector.load %arg1[%c0, %c0_0, %c0_1] : memref<16x16x64xf32, #tpu.memory_space<vmem>>, vector<16x16x64xf32>
    %c0_2 = arith.constant 0 : index
    %c0_3 = arith.constant 0 : index
    %c0_4 = arith.constant 0 : index
    %1 = vector.load %arg2[%c0_2, %c0_3, %c0_4] : memref<16x16x64xf32, #tpu.memory_space<vmem>>, vector<16x16x64xf32>
    %2 = arith.mulf %0, %1 : vector<16x16x64xf32>
    %3 = vector.extract_strided_slice %2 {offsets = [0, 0, 0], sizes = [16, 1, 64], strides = [1, 1, 1]} : vector<16x16x64xf32> to vector<16x1x64xf32>
    %cst = arith.constant dense<0.000000e+00> : vector<16x64xf32>
    %4 = vector.multi_reduction <add>, %3, %cst [1] : vector<16x1x64xf32> to vector<16x64xf32>
    %5 = vector.extract_strided_slice %2 {offsets = [0, 1, 0], sizes = [16, 3, 64], strides = [1, 1, 1]} : vector<16x16x64xf32> to vector<16x3x64xf32>
    %cst_5 = arith.constant dense<0.000000e+00> : vector<16x64xf32>
    %6 = vector.multi_reduction <add>, %5, %cst_5 [1] : vector<16x3x64xf32> to vector<16x64xf32>
    %7 = vector.extract_strided_slice %2 {offsets = [0, 4, 0], sizes = [16, 5, 64], strides = [1, 1, 1]} : vector<16x16x64xf32> to vector<16x5x64xf32>
    %cst_6 = arith.constant dense<0.000000e+00> : vector<16x64xf32>
    %8 = vector.multi_reduction <add>, %7, %cst_6 [1] : vector<16x5x64xf32> to vector<16x64xf32>
    %9 = vector.extract_strided_slice %2 {offsets = [0, 9, 0], sizes = [16, 7, 64], strides = [1, 1, 1]} : vector<16x16x64xf32> to vector<16x7x64xf32>
    %cst_7 = arith.constant dense<0.000000e+00> : vector<16x64xf32>
    %10 = vector.multi_reduction <add>, %9, %cst_7 [1] : vector<16x7x64xf32> to vector<16x64xf32>
    %11 = tpu.concatenate %4, %6, %8, %10 in 1 : vector<16x64xf32>, vector<16x64xf32>, vector<16x64xf32>, vector<16x64xf32> -> vector<16x256xf32>
    %c0_8 = arith.constant 0 : index
    %c0_9 = arith.constant 0 : index
    %12 = vector.load %arg3[%c0_8, %c0_9] : memref<16x256xf32, #tpu.memory_space<vmem>>, vector<16x256xf32>
    tpu.vector_store %arg3[%c0_8, %c0_9], %11 {strides = array<i32>} : memref<16x256xf32, #tpu.memory_space<vmem>>, vector<16x256xf32>,
    return
  }
  func.func @transform_0(%arg0: i32) -> (i32, i32, i32) {
    %c0_i32 = arith.constant 0 : i32
    %c0_i32_0 = arith.constant 0 : i32
    %c0_i32_1 = arith.constant 0 : i32
    return %arg0, %c0_i32, %c0_i32_0 : i32, i32, i32
  }
  func.func @transform_1(%arg0: i32) -> (i32, i32, i32) {
    %c0_i32 = arith.constant 0 : i32
    %c0_i32_0 = arith.constant 0 : i32
    %c0_i32_1 = arith.constant 0 : i32
    return %arg0, %c0_i32, %c0_i32_0 : i32, i32, i32
  }
  func.func @transform_2(%arg0: i32) -> (i32, i32) {
    %c0_i32 = arith.constant 0 : i32
    %c0_i32_0 = arith.constant 0 : i32
    return %arg0, %c0_i32 : i32, i32
  }
}

</mosaic_0001>

<bundles_post_ra>
// kernel: tpu_custom_call.1
= control target key start
LH: loop header
LB: loop body
LE: loop exit
PB: predicated region body
PF: predicated region fallthrough
CT: control target
= control target key end

     0   :  { %7 = vsyncpa [#allocation3], 0  ;;  %s1924_s0 = inlined_call_operand.hbm [shape: f32[32,16,64], index: 0, kind: input, shape index: {}]   ;;  %s1925_s1 = inlined_call_operand.hbm [shape: f32[32,16,64], index: 1, kind: input, shape index: {}]   ;;  %s1926_s2 = inlined_call_operand.hbm [shape: f32[32,256], index: 2, kind: output, shape index: {}]  }
   0x1   :  { %9 = vsyncpa [#allocation3 + $0x1], 0 }
   0x2   :  { %10 = vsyncpa [#allocation6], 0 }
   0x3   :  { %12 = vsyncpa [#allocation6 + $0x1], 0 }
   0x4   :  { %13 = vsyncpa [#allocation4], 0 }
   0x5   :  { %15 = vsyncpa [#allocation4 + $0x1], 0  ;;  %s1334_s9 = smov 0   ;;  %s1336_s10 = smov 0  }
   0x6   :  { %s1338_s11 = smov 0   ;;  %s1340_s12 = smov 0  }
   0x7 LB: > { %s1355_s13 = sadd.s32 4294967295, %s1309_s12   ;;  %s1096_s14 = sadd.s32 4294967294, %s1309_s12   ;;  %s1309_s12 = sphi %s1340_s12, %s1955_s12   ;;  %s1305_s11 = sphi %s1338_s11, %s1954_s11   ;;  %s1301_s10 = sphi %s1336_s10, %s1953_s10   ;;  %s1297_s9 = sphi %s1334_s9, %s1952_s9  }
   0x8   : > { %s1359_s15 = sadd.s32 1, %s1309_s12   ;;  %s28_s16 = sadd.s32 1, %s1305_s11 }
   0x9   : > { %s25_s17 = ssub.s32 %s1309_s12, %s1359_s15  ;;  %p35_p0 = scmp.ne.s32.totalorder %s1305_s11, %s1301_s10 }
   0xa   : > { %p26_p1 = scmp.eq.s32.totalorder %s25_s17, 0  ;;  %p36_p2 = scmp.eq.s32.totalorder %s1309_s12, 0 }
   0xb   : > { %p41_p3 = scmp.ne.s32.totalorder %s1301_s10, %s1297_s9  ;;  %p42_p4 = scmp.eq.s32.totalorder %s1355_s13, 0 }
   0xc   : > { %s1371_s18 = scalar_select %p26_p1, %s1305_s11, %s28_s16  }
   0xd   : > { %p1373_p5 = por %p36_p2, %p35_p0  ;;  %p1377_p6 = por %p42_p4, %p41_p3 }
   0xe   : > { %p91_p7 = scmp.eq.s32.totalorder %s1355_s13, 1  ;;  %p97_p8 = scmp.eq.s32.totalorder %s1096_s14, 1 }
   0xf   : > { %s1932_s20 = scalar_select %p1377_p6, 1, 0 }
  0x10   : > { %p1140_p10 = scmp.lt.s32.totalorder %s1309_s12, 2  ;;  %p1384_p11 = por %p91_p7, %p35_p0 }
  0x11   : > { %p1388_p12 = por %p97_p8, %p41_p3  ;;  %s1393_s23 = sand.u32 1, %s1305_s11  }
  0x12   : > { %s1933_s21 = scalar_select %p1384_p11, 1, 0 }
  0x13   : > { %s1934_s22 = scalar_select %p1388_p12, 1, 0 }
  0x14   : > { %s1118_s24 = sshll.u32 %s1309_s12, 12  ;;  %s1099_s25 = sshll.u32 %s1393_s23, 8 }
  0x15   : > { %s1402_s28 = scalar_lea.hbm %s1924_s0, %s1118_s24  ;;  %s121_s29 = scalar_lea.vmem [#allocation2], %s1099_s25 }
  0x16   : > { %s129_s30 = sshll.u32 %s121_s29, 4  ;;  %p1408_p13 = pnand %p1140_p10, %p1373_p5  ;;  %s1412_s30 = int_to_ptr.vmem [resolvable:$true] %s129_s30 }
  0x17   : > { %s118_s4 = scalar_lea.sflag [#allocation3], %s1393_s23  ;;  %s1179_s5 = scalar_lea.hbm %s1402_s28, 4096 }
  0x18   : > { %p1180_p0 = scmp.ne.s32.totalorder %s1402_s28, %s1179_s5  ;;  %p1181_p1 = pneg %p1408_p13 }
  0x19   : > { %s1184_s8 = scalar_lea.hbm %s1924_s0, 8192  ;;  %p1185_p4 = scmp.lt.u32.totalorder %s1402_s28, %s1924_s0 }
  0x1a   : > { %p1182_p2 = pnand %p1181_p1, %p1180_p0  ;;  %p1186_p5 = scmp.lt.u32.totalorder %s1184_s8, %s1179_s5 }
  0x1b   : > { %p1188_p8 = scmp.lt.u32.totalorder %s1179_s5, %s1402_s28 }
  0x1c   : > { %p1183_p3 = pneg %p1182_p2  ;;  %p1187_p7 = por %p1186_p5, %p1185_p4 }
  0x1e   : > { %p1189_p10 = por %p1188_p8, %p1187_p7 }
  0x20   : > { %p1190_p9 = pnand %p1189_p10, %p1183_p3 }
  0x22   : > { %1193 = shalt.err (!%p1190_p9)
}
  0x23   : > { %s1194_s17 = scalar_lea.vmem %s1412_s30, 4096  ;;  %s1311_s19 = smov [#allocation2]  }
  0x24   : > { %p1195_p0 = scmp.ne.s32.totalorder %s1412_s30, %s1194_s17  ;;  %s1199_s26 = sshll.u32 %s1311_s19, 4  ;;  %s1200_s26 = int_to_ptr.vmem [resolvable:$false] %s1199_s26 }
  0x25   : > { %s1201_s27 = scalar_lea.vmem %s1200_s26, 8192  ;;  %p1202_p11 = scmp.lt.s32.totalorder %s1412_s30, %s1200_s26 }
  0x26   : > { %p1197_p2 = pnand %p1195_p0, %p1181_p1  ;;  %p1203_p4 = scmp.lt.s32.totalorder %s1201_s27, %s1194_s17 }
  0x28   : > { %p1198_p12 = pneg %p1197_p2  ;;  %p1204_p5 = por %p1203_p4, %p1202_p11 }
  0x2a   : > { %p1205_p7 = pnand %p1204_p5, %p1198_p12 }
  0x2c   : > { %1208 = shalt.err (!%p1205_p7)
}
  0x2d   : > { %s1312_s29 = smov 128   ;;  %s1313_s5 = smov 8  }
  0x2e   : > { %1132 = dma.hbm_to_vmem [thread:$0]  (!%p1408_p13), %s1402_s28, 4096, %s1412_s30, %s118_s4, %s1312_s29, %s1312_s29, %s1313_s5  }
  0x2f   : > { %p1107_p9 = scmp.ge.s32.totalorder %s1309_s12, 1  ;;  %p159_p11 = scmp.lt.s32.totalorder %s1309_s12, 3 }
  0x30   : > { %s1456_s14 = scalar_lea.hbm %s1925_s1, %s1118_s24  ;;  %s143_s16 = scalar_lea.vmem [#allocation5], %s1099_s25 }
  0x31   : > { %p1447_p12 = pnand %p1107_p9, %p159_p11  ;;  %s151_s17 = sshll.u32 %s143_s16, 4  ;;  %s1460_s17 = int_to_ptr.vmem [resolvable:$true] %s151_s17 }
  0x32   : > { %s140_s28 = scalar_lea.sflag [#allocation6], %s1393_s23  ;;  %s1209_s30 = scalar_lea.hbm %s1456_s14, 4096 }
  0x33   : > { %p1210_p3 = scmp.ne.s32.totalorder %s1456_s14, %s1209_s30  ;;  %s1214_s24 = scalar_lea.hbm %s1925_s1, 8192 }
  0x34   : > { %p1215_p0 = scmp.lt.u32.totalorder %s1456_s14, %s1925_s1  ;;  %p1216_p2 = scmp.lt.u32.totalorder %s1214_s24, %s1209_s30 }
  0x35   : > { %p1212_p8 = pnand %p1210_p3, %p1181_p1  ;;  %p1218_p5 = scmp.lt.u32.totalorder %s1209_s30, %s1456_s14 }
  0x36   : > { %p1217_p4 = por %p1216_p2, %p1215_p0 }
  0x37   : > { %p1213_p10 = pneg %p1212_p8 }
  0x38   : > { %p1219_p7 = por %p1218_p5, %p1217_p4 }
  0x3a   : > { %p1220_p9 = pnand %p1219_p7, %p1213_p10 }
  0x3c   : > { %1223 = shalt.err (!%p1220_p9)
}
  0x3d   : > { %s1224_s25 = scalar_lea.vmem %s1460_s17, 4096  ;;  %s1314_s7 = smov [#allocation5]  }
  0x3e   : > { %p1225_p11 = scmp.ne.s32.totalorder %s1460_s17, %s1224_s25  ;;  %s1229_s8 = sshll.u32 %s1314_s7, 4  ;;  %s1230_s8 = int_to_ptr.vmem [resolvable:$false] %s1229_s8 }
  0x3f   : > { %s1231_s16 = scalar_lea.vmem %s1230_s8, 8192  ;;  %p1232_p6 = scmp.lt.s32.totalorder %s1460_s17, %s1230_s8 }
  0x40   : > { %p1227_p3 = pnand %p1225_p11, %p1181_p1  ;;  %p1233_p0 = scmp.lt.s32.totalorder %s1231_s16, %s1224_s25 }
  0x42   : > { %p1228_p8 = pneg %p1227_p3  ;;  %p1234_p2 = por %p1233_p0, %p1232_p6 }
  0x44   : > { %p1235_p4 = pnand %p1234_p2, %p1228_p8 }
  0x46   : > { %1238 = shalt.err (!%p1235_p4)
}
  0x47   : > { %1135 = dma.hbm_to_vmem [thread:$0]  (!%p1408_p13), %s1456_s14, 4096, %s1460_s17, %s140_s28, %s1312_s29, %s1312_s29, %s1313_s5  }
  0x48   : > { %163 = sbr.rel (%p1447_p12) target bundleno = 304 (0x130), region = 28  ;;  %s1494_s30 = sand.u32 (!%p1447_p12), 1, %s1301_s10  }
  0x49   : > { %s1108_s4 = sshll.u32 (!%p1447_p12), %s1494_s30, 8  ;;  %s166_s19 = scalar_lea.sflag (!%p1447_p12), [#allocation3], %s1494_s30 }
  0x4a   : > { %s1498_s3 = scalar_lea.vmem (!%p1447_p12), [#allocation2], %s1108_s4  ;;  %p1937_p6 = scmp.ne.s32.totalorder (!%p1447_p12), %s1932_s20, 0 }
  0x4f   : > { %1284 = dma.done.wait (%p1937_p6), %s166_s19, 4096  }
  0x50   : > { %1286 = vsyncadd (%p1937_p6), %s166_s19, 4294963200  ;;  %s175_s23 = scalar_lea.sflag [#allocation6], %s1494_s30  ;;  %s1505_s29 = scalar_lea.vmem [#allocation5], %s1108_s4 }
  0x51   : > { %1288 = dma.done.wait (%p1937_p6), %s175_s23, 4096  }
  0x52   : > { %1290 = vsyncadd (%p1937_p6), %s175_s23, 4294963200  ;;  %v208_v0 = vld [vmem:[%s1498_s3 + $0x8] sm:$0xff]  ;;  %v210_v1 = vld [vmem:[%s1498_s3 + $0x18] sm:$0xff]  ;;  %vm706_vm0 = vcmask 522240   ;;  %vm836_vm1 = vcmask 1041409   ;;  %vm839_vm2 = vcmask 1042434  }
  0x53   : > { %v212_v2 = vld [vmem:[%s1498_s3 + $0x28] sm:$0xff]  ;;  %v214_v3 = vld [vmem:[%s1498_s3 + $0x38] sm:$0xff]  ;;  %vm842_vm3 = vcmask 1043459   ;;  %vm845_vm4 = vcmask 1044484   ;;  %vm848_vm5 = vcmask 1045509   ;;  %vm851_vm6 = vcmask 1046534  }
  0x54   : > { %v216_v4 = vld [vmem:[%s1498_s3 + $0x48] sm:$0xff]  ;;  %v218_v5 = vld [vmem:[%s1498_s3 + $0x58] sm:$0xff]  ;;  %vm854_vm7 = vcmask 1047559   ;;  %vm367_vm8 = vcmask 518144   ;;  %s1315_s20 = smov 64   ;;  %vm496_vm9 = vcmask 1043456  }
  0x55   : > { %v220_v6 = vld [vmem:[%s1498_s3 + $0x68] sm:$0xff]  ;;  %v222_v7 = vld [vmem:[%s1498_s3 + $0x78] sm:$0xff]  ;;  %vm561_vm10 = vcmask 520192   ;;  %s1110_s5 = sshll.u32 %s1494_s30, 5  ;;  %vm976_vm11 = vcmask 523264   ;;  %s1122_s17 = sshll.u32 %s1355_s13, 9 }
  0x56   : > { %v240_v8 = vld [vmem:[%s1505_s29 + $0x8] sm:$0xff]  ;;  %v242_v9 = vld [vmem:[%s1505_s29 + $0x18] sm:$0xff]  ;;  %s203_s6 = scalar_lea.vmem [#allocation7], %s1110_s5  ;;  %s1879_s26 = scalar_lea.hbm %s1926_s2, %s1122_s17 }
  0x57   : > { %v244_v10 = vld [vmem:[%s1505_s29 + $0x28] sm:$0xff]  ;;  %v246_v11 = vld [vmem:[%s1505_s29 + $0x38] sm:$0xff]  ;;  %v1523_v12 = vmul.f32 %v240_v8, %v208_v0  ;;  %v1528_v16 = vmul.f32 %v242_v9, %v210_v1  ;;  %v207_v9 = vld [vmem:[%s1498_s3] sm:$0xff]  ;;  %s1000_s14 = sshll.u32 %s203_s6, 4  ;;  %s986_s27 = scalar_lea.sflag [#allocation4], %s1494_s30  ;;  %s1874_s14 = int_to_ptr.vmem [resolvable:$true] %s1000_s14 }
  0x58   : > { %v248_v13 = vld [vmem:[%s1505_s29 + $0x48] sm:$0xff]  ;;  %v250_v14 = vld [vmem:[%s1505_s29 + $0x58] sm:$0xff]  ;;  %v1530_v17 = vmul.f32 %v244_v10, %v212_v2  ;;  %v1532_v18 = vmul.f32 %v246_v11, %v214_v3  ;;  %v209_v10 = vld [vmem:[%s1498_s3 + $0x10] sm:$0xff]  ;;  %s1239_s25 = scalar_lea.vmem %s1874_s14, 512  ;;  %p1949_p1 = scmp.ne.s32.totalorder %s1933_s21, 0 }
  0x59   : > { %v252_v15 = vld [vmem:[%s1505_s29 + $0x68] sm:$0xff]  ;;  %v254_v19 = vld [vmem:[%s1505_s29 + $0x78] sm:$0xff]  ;;  %v1535_v20 = vmul.f32 %v248_v13, %v216_v4  ;;  %v1537_v21 = vmul.f32 %v250_v14, %v218_v5  ;;  %v674_v23 = vrot.slane %v1523_v12, 1  ;;  %v675_v25 = vrot.slane %v1528_v16, 1  ;;  %v211_v11 = vld [vmem:[%s1498_s3 + $0x20] sm:$0xff]  ;;  %p1240_p13 = scmp.ne.s32.totalorder %s1874_s14, %s1239_s25  ;;  %s1316_s13 = smov [#allocation7]  }
  0x5a   : > { %v1539_v22 = vmul.f32 %v252_v15, %v220_v6  ;;  %v1542_v24 = vmul.f32 %v254_v19, %v222_v7  ;;  %v676_v26 = vrot.slane %v1530_v17, 1  ;;  %v677_v27 = vrot.slane %v1532_v18, 1  ;;  %s1243_s7 = sshll.u32 %s1316_s13, 4  ;;  %s1244_s7 = int_to_ptr.vmem [resolvable:$false] %s1243_s7 }
  0x5b   : > { %v678_v28 = vrot.slane %v1535_v20, 1  ;;  %v679_v29 = vrot.slane %v1537_v21, 1  ;;  %v707_v32 = vsel %vm706_vm0, %v674_v23, 0.0  ;;  %v714_v34 = vsel %vm706_vm0, %v675_v25, 0.0  ;;  %v213_v23 = vld [vmem:[%s1498_s3 + $0x30] sm:$0xff]  ;;  %v215_v25 = vld [vmem:[%s1498_s3 + $0x40] sm:$0xff]  ;;  %p1241_p12 = pnand %p1240_p13, %p1949_p1  ;;  %p1246_p5 = scmp.lt.s32.totalorder %s1874_s14, %s1244_s7 }
  0x5c   : > { %v680_v30 = vrot.slane %v1539_v22, 1  ;;  %v681_v31 = vrot.slane %v1542_v24, 1  ;;  %v708_v33 = vrot.slane %v707_v32, 4  ;;  %v721_v35 = vsel %vm706_vm0, %v676_v26, 0.0  ;;  %v239_v26 = vld [vmem:[%s1505_s29] sm:$0xff]  ;;  %s1245_s8 = scalar_lea.vmem %s1244_s7, 1024 }
  0x5d   : > { %v728_v36 = vsel %vm706_vm0, %v677_v27, 0.0  ;;  %v715_v37 = vrot.slane %v714_v34, 4  ;;  %v722_v38 = vrot.slane %v721_v35, 4  ;;  %v735_v40 = vsel %vm706_vm0, %v678_v28, 0.0  ;;  %v241_v27 = vld [vmem:[%s1505_s29 + $0x10] sm:$0xff]  ;;  %p1242_p10 = pneg %p1241_p12  ;;  %p1247_p7 = scmp.lt.s32.totalorder %s1245_s8, %s1239_s25 }
  0x5e   : > { %v729_v39 = vrot.slane %v728_v36, 4  ;;  %v709_v41 = vadd.f32 %v708_v33, %v707_v32  ;;  %v736_v42 = vrot.slane %v735_v40, 4  ;;  %v742_v43 = vsel %vm706_vm0, %v679_v29, 0.0  ;;  %v217_v32 = vld [vmem:[%s1498_s3 + $0x50] sm:$0xff]  ;;  %v219_v33 = vld [vmem:[%s1498_s3 + $0x60] sm:$0xff] }
  0x5f   : > { %v749_v44 = vsel %vm706_vm0, %v680_v30, 0.0  ;;  %v716_v45 = vadd.f32 %v715_v37, %v714_v34  ;;  %v723_v46 = vadd.f32 %v722_v38, %v721_v35  ;;  %v743_v48 = vrot.slane %v742_v43, 4  ;;  %v243_v34 = vld [vmem:[%s1505_s29 + $0x20] sm:$0xff]  ;;  %v245_v38 = vld [vmem:[%s1505_s29 + $0x30] sm:$0xff]  ;;  %p1248_p9 = por %p1247_p7, %p1246_p5 }
  0x60   : > { %v730_v47 = vadd.f32 %v729_v39, %v728_v36  ;;  %v710_v49 = vrot.slane %v709_v41, 2  ;;  %v737_v50 = vadd.f32 %v736_v42, %v735_v40  ;;  %v750_v51 = vrot.slane %v749_v44, 4  ;;  %v247_v39 = vld [vmem:[%s1505_s29 + $0x40] sm:$0xff]  ;;  %v249_v40 = vld [vmem:[%s1505_s29 + $0x50] sm:$0xff] }
  0x61   : > { %v756_v52 = vsel %vm706_vm0, %v681_v31, 0.0  ;;  %v717_v53 = vrot.slane %v716_v45, 2  ;;  %v724_v54 = vrot.slane %v723_v46, 2  ;;  %v744_v56 = vadd.f32 %v743_v48, %v742_v43  ;;  %v221_v43 = vld [vmem:[%s1498_s3 + $0x70] sm:$0xff]  ;;  %p1249_p11 = pnand %p1248_p9, %p1242_p10 }
  0x62   : > { %v731_v55 = vrot.slane %v730_v47, 2  ;;  %v711_v57 = vadd.f32 %v710_v49, %v709_v41  ;;  %v738_v58 = vrot.slane %v737_v50, 2  ;;  %v751_v59 = vadd.f32 %v750_v51, %v749_v44  ;;  %v251_v44 = vld [vmem:[%s1505_s29 + $0x60] sm:$0xff] }
  0x63   : > { %v757_v60 = vrot.slane %v756_v52, 4  ;;  %v718_v61 = vadd.f32 %v717_v53, %v716_v45  ;;  %v725_v62 = vadd.f32 %v724_v54, %v723_v46  ;;  %v745_v0 = vrot.slane %v744_v56, 2  ;;  %v253_v45 = vld [vmem:[%s1505_s29 + $0x70] sm:$0xff] }
  0x64   : > { %v732_v63 = vadd.f32 %v731_v55, %v730_v47  ;;  %v712_v1 = vrot.slane %v711_v57, 1  ;;  %v739_v2 = vadd.f32 %v738_v58, %v737_v50  ;;  %v752_v3 = vrot.slane %v751_v59, 2 }
  0x65   : > { %v758_v4 = vadd.f32 %v757_v60, %v756_v52  ;;  %v719_v5 = vrot.slane %v718_v61, 1  ;;  %v726_v6 = vrot.slane %v725_v62, 1  ;;  %v746_v8 = vadd.f32 %v745_v0, %v744_v56 }
  0x66   : > { %v733_v7 = vrot.slane %v732_v63, 1  ;;  %v713_v13 = vadd.f32 %v712_v1, %v711_v57  ;;  %v740_v14 = vrot.slane %v739_v2, 1  ;;  %v753_v15 = vadd.f32 %v752_v3, %v751_v59 }
  0x67   : > { %v759_v19 = vrot.slane %v758_v4, 2  ;;  %v720_v28 = vadd.f32 %v719_v5, %v718_v61  ;;  %v727_v29 = vadd.f32 %v726_v6, %v725_v62  ;;  %v747_v31 = vrot.slane %v746_v8, 1 }
  0x68   : > { %v734_v30 = vadd.f32 %v733_v7, %v732_v63  ;;  %v741_v35 = vadd.f32 %v740_v14, %v739_v2  ;;  %v754_v36 = vrot.slane %v753_v15, 1  ;;  %v1576_v46 = vmul.f32 %v239_v26, %v207_v9 }
  0x69   : > { %v760_v37 = vadd.f32 %v759_v19, %v758_v4  ;;  %v748_v41 = vadd.f32 %v747_v31, %v746_v8  ;;  %v956_v42 = vsel %vm836_vm1, %v720_v28, %v713_v13  ;;  %v1578_v47 = vmul.f32 %v241_v27, %v209_v10 }
  0x6a   : > { %v755_v48 = vadd.f32 %v754_v36, %v753_v15  ;;  %v957_v50 = vsel %vm839_vm2, %v727_v29, %v956_v42  ;;  %v1581_v51 = vmul.f32 %v243_v34, %v211_v11  ;;  %v1584_v53 = vmul.f32 %v245_v38, %v213_v23 }
  0x6b   : > { %v761_v49 = vrot.slane %v760_v37, 1  ;;  %v958_v52 = vsel %vm842_vm3, %v734_v30, %v957_v50  ;;  %v1586_v54 = vmul.f32 %v247_v39, %v215_v25  ;;  %v1588_v55 = vmul.f32 %v249_v40, %v217_v32 }
  0x6c   : > { %v959_v57 = vsel %vm845_vm4, %v741_v35, %v958_v52  ;;  %v1591_v58 = vmul.f32 %v251_v44, %v219_v33  ;;  %v1593_v59 = vmul.f32 %v253_v45, %v221_v43  ;;  %v335_v61 = vrot.slane %v1576_v46, 1 }
  0x6d   : > { %v762_v56 = vadd.f32 %v761_v49, %v760_v37  ;;  %v960_v60 = vsel %vm848_vm5, %v748_v41, %v959_v57  ;;  %v336_v62 = vrot.slane %v1578_v47, 1  ;;  %v337_v63 = vrot.slane %v1581_v51, 1 }
  0x6e   : > { %v961_v0 = vsel %vm851_vm6, %v755_v48, %v960_v60  ;;  %v338_v1 = vrot.slane %v1584_v53, 1  ;;  %v339_v2 = vrot.slane %v1586_v54, 1  ;;  %v340_v3 = vrot.slane %v1588_v55, 1 }
  0x6f   : > { %v962_v4 = vsel %vm854_vm7, %v762_v56, %v961_v0  ;;  %v341_v5 = vrot.slane %v1591_v58, 1  ;;  %v1929_v6 = vrot.slane %v1593_v59, 1  ;;  %v368_v7 = vsel %vm367_vm8, %v335_v61, 0.0 }
  0x70   : > { %970 = vrot.lane.b32.xlu1 %v962_v4, %s1315_s20  ;;  %v369_v8 = vrot.slane %v368_v7, 4  ;;  %v375_v9 = vsel %vm367_vm8, %v336_v62, 0.0  ;;  %v382_v10 = vsel %vm367_vm8, %v337_v63, 0.0  ;;  %v389_v11 = vsel %vm367_vm8, %v338_v1, 0.0  ;;  %v224_v4 = vld [vmem:[%s1498_s3 + $0x88] sm:$0xff] }
  0x71   : > { %v376_v13 = vrot.slane %v375_v9, 4  ;;  %v383_v14 = vrot.slane %v382_v10, 4  ;;  %v390_v15 = vrot.slane %v389_v11, 4  ;;  %v396_v19 = vsel %vm367_vm8, %v339_v2, 0.0 }
  0x72   : > { %v370_v23 = vadd.f32 %v369_v8, %v368_v7  ;;  %v397_v25 = vrot.slane %v396_v19, 4  ;;  %v403_v26 = vsel %vm367_vm8, %v340_v3, 0.0  ;;  %v410_v27 = vsel %vm367_vm8, %v341_v5, 0.0  ;;  %v226_v5 = vld [vmem:[%s1498_s3 + $0x98] sm:$0xff] }
  0x73   : > { %v377_v28 = vadd.f32 %v376_v13, %v375_v9  ;;  %v384_v29 = vadd.f32 %v383_v14, %v382_v10  ;;  %v391_v30 = vadd.f32 %v390_v15, %v389_v11  ;;  %v404_v31 = vrot.slane %v403_v26, 4  ;;  %v228_v11 = vld [vmem:[%s1498_s3 + $0xa8] sm:$0xff]  ;;  %v230_v13 = vld [vmem:[%s1498_s3 + $0xb8] sm:$0xff] }
  0x74   : > { %v371_v32 = vrot.slane %v370_v23, 2  ;;  %v398_v33 = vadd.f32 %v397_v25, %v396_v19  ;;  %v411_v34 = vrot.slane %v410_v27, 4  ;;  %v417_v35 = vsel %vm367_vm8, %v1929_v6, 0.0  ;;  %v232_v14 = vld [vmem:[%s1498_s3 + $0xc8] sm:$0xff]  ;;  %v234_v25 = vld [vmem:[%s1498_s3 + $0xd8] sm:$0xff] }
  0x75   : > { %v378_v36 = vrot.slane %v377_v28, 2  ;;  %v385_v37 = vrot.slane %v384_v29, 2  ;;  %v392_v38 = vrot.slane %v391_v30, 2  ;;  %v405_v39 = vadd.f32 %v404_v31, %v403_v26  ;;  %v236_v26 = vld [vmem:[%s1498_s3 + $0xe8] sm:$0xff] }
  0x76   : > { %v372_v40 = vadd.f32 %v371_v32, %v370_v23  ;;  %v399_v41 = vrot.slane %v398_v33, 2  ;;  %v412_v42 = vadd.f32 %v411_v34, %v410_v27  ;;  %v418_v43 = vrot.slane %v417_v35, 4  ;;  %v256_v27 = vld [vmem:[%s1505_s29 + $0x88] sm:$0xff]  ;;  %v262_v34 = vld [vmem:[%s1505_s29 + $0xb8] sm:$0xff] }
  0x77   : > { %v379_v44 = vadd.f32 %v378_v36, %v377_v28  ;;  %v386_v45 = vadd.f32 %v385_v37, %v384_v29  ;;  %v393_v48 = vadd.f32 %v392_v38, %v391_v30  ;;  %v406_v49 = vrot.slane %v405_v39, 2  ;;  %v258_v28 = vld [vmem:[%s1505_s29 + $0x98] sm:$0xff]  ;;  %v260_v29 = vld [vmem:[%s1505_s29 + $0xa8] sm:$0xff]  ;;  %v269_v36 = vld [vmem:[%s1505_s29 + $0xf0] sm:$0xff] }
  0x78   : > { %v373_v50 = vrot.slane %v372_v40, 1  ;;  %v400_v52 = vadd.f32 %v399_v41, %v398_v33  ;;  %v413_v56 = vrot.slane %v412_v42, 2  ;;  %v419_v57 = vadd.f32 %v418_v43, %v417_v35  ;;  %v238_v33 = vld [vmem:[%s1498_s3 + $0xf8] sm:$0xff]  ;;  %v264_v35 = vld [vmem:[%s1505_s29 + $0xc8] sm:$0xff] }
  0x79   : > { %v380_v60 = vrot.slane %v379_v44, 1  ;;  %v387_v61 = vrot.slane %v386_v45, 1  ;;  %v394_v62 = vrot.slane %v393_v48, 1  ;;  %v407_v63 = vadd.f32 %v406_v49, %v405_v39  ;;  %v268_v41 = vld [vmem:[%s1505_s29 + $0xe8] sm:$0xff] }
  0x7a   : > { %v374_v0 = vadd.f32 %v373_v50, %v372_v40  ;;  %v401_v1 = vrot.slane %v400_v52, 1  ;;  %v414_v2 = vadd.f32 %v413_v56, %v412_v42  ;;  %v420_v3 = vrot.slane %v419_v57, 2  ;;  %v266_v40 = vld [vmem:[%s1505_s29 + $0xd8] sm:$0xff] }
  0x7b   : > { %v381_v7 = vadd.f32 %v380_v60, %v379_v44  ;;  %v388_v8 = vadd.f32 %v387_v61, %v386_v45  ;;  %v395_v9 = vadd.f32 %v394_v62, %v393_v48  ;;  %v408_v10 = vrot.slane %v407_v63, 1  ;;  %v270_v42 = vld [vmem:[%s1505_s29 + $0xf8] sm:$0xff] }
  0x7c   : > { %v402_v15 = vadd.f32 %v401_v1, %v400_v52  ;;  %v415_v19 = vrot.slane %v414_v2, 1  ;;  %v421_v23 = vadd.f32 %v420_v3, %v419_v57  ;;  %v1638_v44 = vmul.f32 %v256_v27, %v224_v4  ;;  %v233_v3 = vld [vmem:[%s1498_s3 + $0xd0] sm:$0xff]  ;;  %v235_v1 = vld [vmem:[%s1498_s3 + $0xe0] sm:$0xff] }
  0x7d   : > { %v409_v31 = vadd.f32 %v408_v10, %v407_v63  ;;  %v888_v32 = vsel %vm836_vm1, %v381_v7, %v374_v0  ;;  %v1640_v45 = vmul.f32 %v258_v28, %v226_v5  ;;  %v1642_v48 = vmul.f32 %v260_v29, %v228_v11  ;;  %v237_v4 = vld [vmem:[%s1498_s3 + $0xf0] sm:$0xff]  ;;  %v267_v63 = vld [vmem:[%s1505_s29 + $0xe0] sm:$0xff] }
  0x7e   : > { %v416_v37 = vadd.f32 %v415_v19, %v414_v2  ;;  %v422_v38 = vrot.slane %v421_v23, 1  ;;  %v889_v39 = vsel %vm839_vm2, %v388_v8, %v888_v32  ;;  %v1645_v52 = vmul.f32 %v262_v34, %v230_v13 }
  0x7f   : > { %v890_v43 = vsel %vm842_vm3, %v395_v9, %v889_v39  ;;  %v1647_v56 = vmul.f32 %v264_v35, %v232_v14  ;;  %v1650_v60 = vmul.f32 %v266_v40, %v234_v25  ;;  %v1652_v61 = vmul.f32 %v268_v41, %v236_v26 }
  0x80   : > { %v423_v49 = vadd.f32 %v422_v38, %v421_v23  ;;  %v891_v50 = vsel %vm845_vm4, %v402_v15, %v890_v43  ;;  %v1654_v62 = vmul.f32 %v270_v42, %v238_v33  ;;  %v682_v8 = vrot.slane %v1638_v44, 1 }
  0x81   : > { %v892_v57 = vsel %vm848_vm5, %v409_v31, %v891_v50  ;;  %v683_v9 = vrot.slane %v1640_v45, 1  ;;  %v684_v10 = vrot.slane %v1642_v48, 1  ;;  %v685_v11 = vrot.slane %v1645_v52, 1 }
  0x82   : > { %v893_v2 = vsel %vm851_vm6, %v416_v37, %v892_v57  ;;  %v686_v13 = vrot.slane %v1647_v56, 1  ;;  %v687_v14 = vrot.slane %v1650_v60, 1  ;;  %v688_v15 = vrot.slane %v1652_v61, 1 }
  0x83   : > { %v894_v7 = vsel %vm854_vm7, %v423_v49, %v893_v2  ;;  %v689_v19 = vrot.slane %v1654_v62, 1  ;;  %v763_v23 = vsel %vm706_vm0, %v682_v8, 0.0  ;;  %v770_v25 = vsel %vm706_vm0, %v683_v9, 0.0 }
  0x84   : > { %902 = vrot.lane.b32.xlu0 %v894_v7, %s1315_s20  ;;  %v777_v26 = vsel %vm706_vm0, %v684_v10, 0.0  ;;  %v784_v27 = vsel %vm706_vm0, %v685_v11, 0.0  ;;  %v764_v28 = vrot.slane %v763_v23, 4  ;;  %v771_v29 = vrot.slane %v770_v25, 4 }
  0x85   : > { %v778_v31 = vrot.slane %v777_v26, 4  ;;  %v785_v32 = vrot.slane %v784_v27, 4  ;;  %v791_v33 = vsel %vm706_vm0, %v686_v13, 0.0  ;;  %v798_v34 = vsel %vm706_vm0, %v687_v14, 0.0 }
  0x86   : > { %v805_v35 = vsel %vm706_vm0, %v688_v15, 0.0  ;;  %v812_v37 = vsel %vm706_vm0, %v689_v19, 0.0  ;;  %v765_v38 = vadd.f32 %v764_v28, %v763_v23  ;;  %v772_v39 = vadd.f32 %v771_v29, %v770_v25  ;;  %v223_v29 = vld [vmem:[%s1498_s3 + $0x80] sm:$0xff] }
  0x87   : > { %v779_v40 = vadd.f32 %v778_v31, %v777_v26  ;;  %v786_v41 = vadd.f32 %v785_v32, %v784_v27  ;;  %v792_v42 = vrot.slane %v791_v33, 4  ;;  %v799_v43 = vrot.slane %v798_v34, 4 }
  0x88   : > { %v806_v49 = vrot.slane %v805_v35, 4  ;;  %v813_v50 = vrot.slane %v812_v37, 4  ;;  %v766_v57 = vrot.slane %v765_v38, 2  ;;  %v773_v2 = vrot.slane %v772_v39, 2 }
  0x89   : > { %v780_v7 = vrot.slane %v779_v40, 2  ;;  %v787_v8 = vrot.slane %v786_v41, 2  ;;  %v793_v9 = vadd.f32 %v792_v42, %v791_v33  ;;  %v800_v10 = vadd.f32 %v799_v43, %v798_v34  ;;  %v229_v42 = vld [vmem:[%s1498_s3 + $0xb0] sm:$0xff]  ;;  %v231_v43 = vld [vmem:[%s1498_s3 + $0xc0] sm:$0xff] }
  0x8a   : > { %v807_v11 = vadd.f32 %v806_v49, %v805_v35  ;;  %v814_v13 = vadd.f32 %v813_v50, %v812_v37  ;;  %v767_v14 = vadd.f32 %v766_v57, %v765_v38  ;;  %v774_v15 = vadd.f32 %v773_v2, %v772_v39  ;;  %v225_v35 = vld [vmem:[%s1498_s3 + $0x90] sm:$0xff]  ;;  %v227_v37 = vld [vmem:[%s1498_s3 + $0xa0] sm:$0xff] }
  0x8b   : > { %v781_v19 = vadd.f32 %v780_v7, %v779_v40  ;;  %v788_v23 = vadd.f32 %v787_v8, %v786_v41  ;;  %v794_v25 = vrot.slane %v793_v9, 2  ;;  %v801_v26 = vrot.slane %v800_v10, 2  ;;  %v255_v49 = vld [vmem:[%s1505_s29 + $0x80] sm:$0xff]  ;;  %v257_v50 = vld [vmem:[%s1505_s29 + $0x90] sm:$0xff] }
  0x8c   : > { %v808_v27 = vrot.slane %v807_v11, 2  ;;  %v815_v28 = vrot.slane %v814_v13, 2  ;;  %v768_v31 = vrot.slane %v767_v14, 1  ;;  %v775_v32 = vrot.slane %v774_v15, 1  ;;  %v259_v57 = vld [vmem:[%s1505_s29 + $0xa0] sm:$0xff] }
  0x8d   : > { %v782_v33 = vrot.slane %v781_v19, 1  ;;  %v789_v34 = vrot.slane %v788_v23, 1  ;;  %v795_v38 = vadd.f32 %v794_v25, %v793_v9  ;;  %v802_v39 = vadd.f32 %v801_v26, %v800_v10  ;;  %v261_v9 = vld [vmem:[%s1505_s29 + $0xb0] sm:$0xff]  ;;  %v263_v26 = vld [vmem:[%s1505_s29 + $0xc0] sm:$0xff] }
  0x8e   : > { %v809_v40 = vadd.f32 %v808_v27, %v807_v11  ;;  %v816_v41 = vadd.f32 %v815_v28, %v814_v13  ;;  %v769_v2 = vadd.f32 %v768_v31, %v767_v14  ;;  %v776_v7 = vadd.f32 %v775_v32, %v774_v15  ;;  %v265_v27 = vld [vmem:[%s1505_s29 + $0xd0] sm:$0xff] }
  0x8f   : > { %v783_v8 = vadd.f32 %v782_v33, %v781_v19  ;;  %v790_v6 = vadd.f32 %v789_v34, %v788_v23  ;;  %v796_v10 = vrot.slane %v795_v38, 1  ;;  %v803_v11 = vrot.slane %v802_v39, 1 }
  0x90   : > { %v810_v13 = vrot.slane %v809_v40, 1  ;;  %v817_v25 = vrot.slane %v816_v41, 1  ;;  %v963_v28 = vsel %vm836_vm1, %v776_v7, %v769_v2  ;;  %v1698_v30 = vmul.f32 %v255_v49, %v223_v29 }
  0x91   : > { %v1700_v14 = vmul.f32 %v257_v50, %v225_v35  ;;  %v1702_v15 = vmul.f32 %v259_v57, %v227_v37  ;;  %v797_v19 = vadd.f32 %v796_v10, %v795_v38  ;;  %v804_v23 = vadd.f32 %v803_v11, %v802_v39 }
  0x92   : > { %v811_v31 = vadd.f32 %v810_v13, %v809_v40  ;;  %v818_v32 = vadd.f32 %v817_v25, %v816_v41  ;;  %v964_v33 = vsel %vm839_vm2, %v783_v8, %v963_v28  ;;  %v1705_v34 = vmul.f32 %v261_v9, %v229_v42 }
  0x93   : > { %v1707_v5 = vmul.f32 %v263_v26, %v231_v43  ;;  %v1709_v2 = vmul.f32 %v265_v27, %v233_v3  ;;  %v965_v7 = vsel %vm842_vm3, %v790_v6, %v964_v33  ;;  %v1712_v29 = vmul.f32 %v267_v63, %v235_v1 }
  0x94   : > { %v1714_v35 = vmul.f32 %v269_v36, %v237_v4  ;;  %v343_v37 = vrot.slane %v1698_v30, 1  ;;  %v966_v38 = vsel %vm845_vm4, %v797_v19, %v965_v7  ;;  %v344_v39 = vrot.slane %v1700_v14, 1 }
  0x95   : > { %v345_v40 = vrot.slane %v1702_v15, 1  ;;  %v346_v41 = vrot.slane %v1705_v34, 1  ;;  %v967_v42 = vsel %vm848_vm5, %v804_v23, %v966_v38  ;;  %v347_v3 = vrot.slane %v1707_v5, 1 }
  0x96   : > { %v348_v6 = vrot.slane %v1709_v2, 1  ;;  %v349_v63 = vrot.slane %v1712_v29, 1  ;;  %v968_v36 = vsel %vm851_vm6, %v811_v31, %v967_v42  ;;  %v1930_v1 = vrot.slane %v1714_v35, 1 }
  0x97   : > { %v424_v4 = vsel %vm367_vm8, %v343_v37, 0.0  ;;  %v431_v43 = vsel %vm367_vm8, %v344_v39, 0.0  ;;  %v969_v49 = vsel %vm854_vm7, %v818_v32, %v968_v36  ;;  %v438_v8 = vsel %vm367_vm8, %v345_v40, 0.0 }
  0x98   : > { %v425_v50 = vrot.slane %v424_v4, 4  ;;  %v432_v57 = vrot.slane %v431_v43, 4  ;;  %972 = vrot.lane.b32.xlu1 %v969_v49, %s1315_s20  ;;  %v439_v9 = vrot.slane %v438_v8, 4  ;;  %v445_v10 = vsel %vm367_vm8, %v346_v41, 0.0 }
  0x99   : > { %v452_v11 = vsel %vm367_vm8, %v347_v3, 0.0  ;;  %v459_v13 = vsel %vm367_vm8, %v348_v6, 0.0  ;;  %v446_v27 = vrot.slane %v445_v10, 4  ;;  %v466_v31 = vsel %vm367_vm8, %v349_v63, 0.0 }
  0x9a   : > { %v426_v25 = vadd.f32 %v425_v50, %v424_v4  ;;  %v433_v26 = vadd.f32 %v432_v57, %v431_v43  ;;  %v453_v28 = vrot.slane %v452_v11, 4  ;;  %v440_v19 = vadd.f32 %v439_v9, %v438_v8 }
  0x9b   : > { %v460_v23 = vrot.slane %v459_v13, 4  ;;  %v473_v32 = vsel %vm367_vm8, %v1930_v1, 0.0  ;;  %v447_v37 = vadd.f32 %v446_v27, %v445_v10  ;;  %v467_v41 = vrot.slane %v466_v31, 4 }
  0x9c   : > { %v427_v33 = vrot.slane %v426_v25, 2  ;;  %v434_v7 = vrot.slane %v433_v26, 2  ;;  %v454_v38 = vadd.f32 %v453_v28, %v452_v11  ;;  %v441_v39 = vrot.slane %v440_v19, 2 }
  0x9d   : > { %v461_v40 = vadd.f32 %v460_v23, %v459_v13  ;;  %v474_v42 = vrot.slane %v473_v32, 4  ;;  %v448_v36 = vrot.slane %v447_v37, 2  ;;  %v468_v63 = vadd.f32 %v467_v41, %v466_v31 }
  0x9e   : > { %v428_v3 = vadd.f32 %v427_v33, %v426_v25  ;;  %v435_v6 = vadd.f32 %v434_v7, %v433_v26  ;;  %v455_v4 = vrot.slane %v454_v38, 2  ;;  %v442_v43 = vadd.f32 %v441_v39, %v440_v19 }
  0x9f   : > { %v462_v49 = vrot.slane %v461_v40, 2  ;;  %v475_v50 = vadd.f32 %v474_v42, %v473_v32  ;;  %v449_v9 = vadd.f32 %v448_v36, %v447_v37  ;;  %v469_v27 = vrot.slane %v468_v63, 2 }
  0xa0   : > { %v429_v57 = vrot.slane %v428_v3, 1  ;;  %v436_v8 = vrot.slane %v435_v6, 1  ;;  %v456_v1 = vadd.f32 %v455_v4, %v454_v38  ;;  %v443_v10 = vrot.slane %v442_v43, 1 }
  0xa1   : > { %v463_v11 = vadd.f32 %v462_v49, %v461_v40  ;;  %v476_v13 = vrot.slane %v475_v50, 2  ;;  %v450_v0 = vrot.slane %v449_v9, 1  ;;  %v470_v7 = vadd.f32 %v469_v27, %v468_v63 }
  0xa2   : > { %v430_v28 = vadd.f32 %v429_v57, %v428_v3  ;;  %v437_v23 = vadd.f32 %v436_v8, %v435_v6  ;;  %v457_v25 = vrot.slane %v456_v1, 1  ;;  %v444_v26 = vadd.f32 %v443_v10, %v442_v43 }
  0xa3   : > { %v464_v33 = vrot.slane %v463_v11, 1  ;;  %v477_v19 = vadd.f32 %v476_v13, %v475_v50  ;;  %v498_v31 = vrot.slane %v1523_v12, 4  ;;  %v518_v32 = vrot.slane %v1593_v59, 4 }
  0xa4   : > { %v451_v39 = vadd.f32 %v450_v0, %v449_v9  ;;  %v458_v41 = vadd.f32 %v457_v25, %v456_v1  ;;  %v471_v38 = vrot.slane %v470_v7, 1  ;;  %v895_v40 = vsel %vm836_vm1, %v437_v23, %v430_v28 }
  0xa5   : > { %v465_v37 = vadd.f32 %v464_v33, %v463_v11  ;;  %v478_v42 = vrot.slane %v477_v19, 1  ;;  %v896_v3 = vsel %vm839_vm2, %v444_v26, %v895_v40  ;;  %v500_v6 = vrot.slane %v1578_v47, 4 }
  0xa6   : > { %v503_v36 = vrot.slane %v1581_v51, 4  ;;  %v506_v4 = vrot.slane %v1584_v53, 4  ;;  %v472_v43 = vadd.f32 %v471_v38, %v470_v7  ;;  %v897_v12 = vsel %vm842_vm3, %v451_v39, %v896_v3 }
  0xa7   : > { %v479_v49 = vadd.f32 %v478_v42, %v477_v19  ;;  %v1938_v0 = vrot.slane %v1535_v20, 4  ;;  %v1939_v1 = vrot.slane %v1586_v54, 4  ;;  %v898_v50 = vsel %vm845_vm4, %v458_v41, %v897_v12 }
  0xa8   : > { %v1940_v57 = vrot.slane %v1528_v16, 4  ;;  %v1941_v9 = vrot.slane %v1530_v17, 4  ;;  %v1942_v11 = vrot.slane %v1532_v18, 4  ;;  %v899_v20 = vsel %vm848_vm5, %v465_v37, %v898_v50 }
  0xa9   : > { %v511_v63 = vsel %vm496_vm9, %v1939_v1, %v1938_v0  ;;  %v512_v13 = vrot.slane %v1588_v55, 4  ;;  %v515_v28 = vrot.slane %v1591_v58, 4  ;;  %v1943_v23 = vrot.slane %v1542_v24, 4 }
  0xaa   : > { %v502_v8 = vsel %vm496_vm9, %v500_v6, %v1940_v57  ;;  %v505_v10 = vsel %vm496_vm9, %v503_v36, %v1941_v9  ;;  %v508_v27 = vsel %vm496_vm9, %v506_v4, %v1942_v11  ;;  %v900_v25 = vsel %vm851_vm6, %v472_v43, %v899_v20 }
  0xab   : > { %v520_v16 = vsel %vm496_vm9, %v518_v32, %v1943_v23  ;;  %v569_v17 = vsel %vm561_vm10, %v502_v8, 0.0  ;;  %v576_v26 = vsel %vm561_vm10, %v505_v10, 0.0  ;;  %v583_v18 = vsel %vm561_vm10, %v508_v27, 0.0 }
  0xac   : > { %v901_v33 = vsel %vm854_vm7, %v479_v49, %v900_v25  ;;  %v1944_v7 = vrot.slane %v1537_v21, 4  ;;  %v1945_v39 = vrot.slane %v1539_v22, 4  ;;  %v570_v41 = vrot.slane %v569_v17, 4 }
  0xad   : > { %904 = vrot.lane.b32.xlu0 %v901_v33, %s1315_s20  ;;  %v577_v32 = vrot.slane %v576_v26, 4  ;;  %v584_v37 = vrot.slane %v583_v18, 4  ;;  %v590_v38 = vsel %vm561_vm10, %v511_v63, 0.0  ;;  %v611_v22 = vsel %vm561_vm10, %v520_v16, 0.0 }
  0xae   : > { %v514_v19 = vsel %vm496_vm9, %v512_v13, %v1944_v7  ;;  %v517_v24 = vsel %vm496_vm9, %v515_v28, %v1945_v39  ;;  %v571_v40 = vadd.f32 %v570_v41, %v569_v17  ;;  %v591_v3 = vrot.slane %v590_v38, 4 }
  0xaf   : > { %v597_v42 = vsel %vm561_vm10, %v514_v19, 0.0  ;;  %v604_v21 = vsel %vm561_vm10, %v517_v24, 0.0  ;;  %v578_v36 = vadd.f32 %v577_v32, %v576_v26  ;;  %v585_v4 = vadd.f32 %v584_v37, %v583_v18 }
  0xb0   : > { %v598_v6 = vrot.slane %v597_v42, 4  ;;  %v605_v43 = vrot.slane %v604_v21, 4  ;;  %v572_v49 = vrot.slane %v571_v40, 2  ;;  %v592_v12 = vadd.f32 %v591_v3, %v590_v38 }
  0xb1   : > { %v612_v1 = vrot.slane %v611_v22, 4  ;;  %v579_v50 = vrot.slane %v578_v36, 2  ;;  %v586_v57 = vrot.slane %v585_v4, 2  ;;  %v497_v63 = vrot.slane %v1576_v46, 4 }
  0xb2   : > { %v599_v0 = vadd.f32 %v598_v6, %v597_v42  ;;  %v606_v8 = vadd.f32 %v605_v43, %v604_v21  ;;  %v573_v9 = vadd.f32 %v572_v49, %v571_v40  ;;  %v593_v10 = vrot.slane %v592_v12, 2 }
  0xb3   : > { %v613_v27 = vadd.f32 %v612_v1, %v611_v22  ;;  %v580_v20 = vadd.f32 %v579_v50, %v578_v36  ;;  %v587_v13 = vadd.f32 %v586_v57, %v585_v4  ;;  %v499_v23 = vsel %vm496_vm9, %v497_v63, %v498_v31 }
  0xb4   : > { %v600_v11 = vrot.slane %v599_v0, 2  ;;  %v607_v28 = vrot.slane %v606_v8, 2  ;;  %v522_v16 = vrot.slane %v1638_v44, 4  ;;  %v525_v17 = vrot.slane %v1640_v45, 4 }
  0xb5   : > { %v614_v25 = vrot.slane %v613_v27, 2  ;;  %v528_v26 = vrot.slane %v1642_v48, 4  ;;  %v594_v18 = vadd.f32 %v593_v10, %v592_v12  ;;  %v562_v33 = vsel %vm561_vm10, %v499_v23, 0.0 }
  0xb6   : > { %v574_v7 = vrot.slane %v573_v9, 1  ;;  %v581_v19 = vrot.slane %v580_v20, 1  ;;  %v588_v39 = vrot.slane %v587_v13, 1  ;;  %v601_v24 = vadd.f32 %v600_v11, %v599_v0 }
  0xb7   : > { %v531_v41 = vrot.slane %v1645_v52, 4  ;;  %v534_v32 = vrot.slane %v1647_v56, 4  ;;  %v608_v37 = vadd.f32 %v607_v28, %v606_v8  ;;  %v563_v31 = vrot.slane %v562_v33, 4 }
  0xb8   : > { %v537_v44 = vrot.slane %v1650_v60, 4  ;;  %v540_v38 = vrot.slane %v1652_v61, 4  ;;  %v533_v45 = vrot.slane %v1707_v5, 4  ;;  %v615_v48 = vadd.f32 %v614_v25, %v613_v27 }
  0xb9   : > { %v543_v42 = vrot.slane %v1654_v62, 4  ;;  %v542_v40 = vrot.slane %v1714_v35, 4  ;;  %v595_v3 = vrot.slane %v594_v18, 1  ;;  %v564_v6 = vadd.f32 %v563_v31, %v562_v33 }
  0xba   : > { %v575_v21 = vadd.f32 %v574_v7, %v573_v9  ;;  %v582_v36 = vadd.f32 %v581_v19, %v580_v20  ;;  %v589_v52 = vadd.f32 %v588_v39, %v587_v13  ;;  %v602_v4 = vrot.slane %v601_v24, 1 }
  0xbb   : > { %v609_v56 = vrot.slane %v608_v37, 1  ;;  %v565_v43 = vrot.slane %v564_v6, 2  ;;  %v521_v22 = vrot.slane %v1698_v30, 4  ;;  %v524_v60 = vrot.slane %v1700_v14, 4 }
  0xbc   : > { %v616_v61 = vrot.slane %v615_v48, 1  ;;  %v527_v49 = vrot.slane %v1702_v15, 4  ;;  %v530_v12 = vrot.slane %v1705_v34, 4  ;;  %v535_v62 = vsel %vm496_vm9, %v533_v45, %v534_v32 }
  0xbd   : > { %v596_v0 = vadd.f32 %v595_v3, %v594_v18  ;;  %v566_v1 = vadd.f32 %v565_v43, %v564_v6  ;;  %v523_v50 = vsel %vm496_vm9, %v521_v22, %v522_v16  ;;  %v526_v57 = vsel %vm496_vm9, %v524_v60, %v525_v17 }
  0xbe   : > { %v603_v8 = vadd.f32 %v602_v4, %v601_v24  ;;  %v529_v63 = vsel %vm496_vm9, %v527_v49, %v528_v26  ;;  %v532_v9 = vsel %vm496_vm9, %v530_v12, %v531_v41  ;;  %v536_v10 = vrot.slane %v1709_v2, 4 }
  0xbf   : > { %v610_v11 = vadd.f32 %v609_v56, %v608_v37  ;;  %v567_v27 = vrot.slane %v566_v1, 1  ;;  %v539_v20 = vrot.slane %v1712_v29, 4  ;;  %v544_v13 = vsel %vm496_vm9, %v542_v40, %v543_v42 }
  0xc0   : > { %v617_v28 = vadd.f32 %v616_v61, %v615_v48  ;;  %v538_v23 = vsel %vm496_vm9, %v536_v10, %v537_v44  ;;  %v618_v16 = vsel %vm561_vm10, %v523_v50, 0.0  ;;  %v625_v25 = vsel %vm561_vm10, %v526_v57, 0.0 }
  0xc1   : > { %v568_v17 = vadd.f32 %v567_v27, %v566_v1  ;;  %v541_v26 = vsel %vm496_vm9, %v539_v20, %v540_v38  ;;  %v619_v18 = vrot.slane %v618_v16, 4  ;;  %v626_v33 = vrot.slane %v625_v25, 4 }
  0xc2   : > { %v632_v7 = vsel %vm561_vm10, %v529_v63, 0.0  ;;  %v639_v19 = vsel %vm561_vm10, %v532_v9, 0.0  ;;  %v646_v39 = vsel %vm561_vm10, %v535_v62, 0.0  ;;  %v653_v24 = vsel %vm561_vm10, %v538_v23, 0.0 }
  0xc3   : > { %v924_v41 = vsel %vm836_vm1, %v575_v21, %v568_v17  ;;  %v620_v32 = vadd.f32 %v619_v18, %v618_v16  ;;  %v627_v37 = vadd.f32 %v626_v33, %v625_v25  ;;  %v633_v31 = vrot.slane %v632_v7, 4 }
  0xc4   : > { %v925_v44 = vsel %vm839_vm2, %v582_v36, %v924_v41  ;;  %v640_v48 = vrot.slane %v639_v19, 4  ;;  %v647_v42 = vrot.slane %v646_v39, 4  ;;  %v654_v38 = vrot.slane %v653_v24, 4 }
  0xc5   : > { %v926_v40 = vsel %vm842_vm3, %v589_v52, %v925_v44  ;;  %v621_v3 = vrot.slane %v620_v32, 2  ;;  %v628_v6 = vrot.slane %v627_v37, 2  ;;  %v634_v4 = vadd.f32 %v633_v31, %v632_v7 }
  0xc6   : > { %v927_v56 = vsel %vm845_vm4, %v596_v0, %v926_v40  ;;  %v641_v43 = vadd.f32 %v640_v48, %v639_v19  ;;  %v648_v22 = vadd.f32 %v647_v42, %v646_v39  ;;  %v655_v60 = vadd.f32 %v654_v38, %v653_v24 }
  0xc7   : > { %v928_v21 = vsel %vm848_vm5, %v603_v8, %v927_v56  ;;  %v622_v61 = vadd.f32 %v621_v3, %v620_v32  ;;  %v629_v49 = vadd.f32 %v628_v6, %v627_v37  ;;  %v635_v12 = vrot.slane %v634_v4, 2 }
  0xc8   : > { %v929_v36 = vsel %vm851_vm6, %v610_v11, %v928_v21  ;;  %v642_v62 = vrot.slane %v641_v43, 2  ;;  %v649_v1 = vrot.slane %v648_v22, 2  ;;  %v656_v50 = vrot.slane %v655_v60, 2 }
  0xc9   : > { %v930_v52 = vsel %vm854_vm7, %v617_v28, %v929_v36  ;;  %v623_v57 = vrot.slane %v622_v61, 1  ;;  %v630_v63 = vrot.slane %v629_v49, 1  ;;  %v636_v9 = vadd.f32 %v635_v12, %v634_v4 }
  0xca   : > { %v643_v10 = vadd.f32 %v642_v62, %v641_v43  ;;  %v650_v0 = vadd.f32 %v649_v1, %v648_v22  ;;  %v657_v27 = vadd.f32 %v656_v50, %v655_v60  ;;  %v660_v20 = vsel %vm561_vm10, %v541_v26, 0.0 }
  0xcb   : > { %v624_v23 = vadd.f32 %v623_v57, %v622_v61  ;;  %v631_v8 = vadd.f32 %v630_v63, %v629_v49  ;;  %v637_v16 = vrot.slane %v636_v9, 1  ;;  %v661_v25 = vrot.slane %v660_v20, 4 }
  0xcc   : > { %v644_v17 = vrot.slane %v643_v10, 1  ;;  %v651_v18 = vrot.slane %v650_v0, 1  ;;  %v658_v11 = vrot.slane %v657_v27, 1  ;;  %v667_v33 = vsel %vm561_vm10, %v544_v13, 0.0 }
  0xcd   : > { %v638_v7 = vadd.f32 %v637_v16, %v636_v9  ;;  %v662_v19 = vadd.f32 %v661_v25, %v660_v20  ;;  %v668_v28 = vrot.slane %v667_v33, 4  ;;  %v931_v39 = vsel %vm836_vm1, %v631_v8, %v624_v23 }
  0xce   : > { %v645_v24 = vadd.f32 %v644_v17, %v643_v10  ;;  %v652_v41 = vadd.f32 %v651_v18, %v650_v0  ;;  %v659_v32 = vadd.f32 %v658_v11, %v657_v27  ;;  %v856_v37 = vrot.slane %v1700_v14, 7 }
  0xcf   : > { %v663_v26 = vrot.slane %v662_v19, 2  ;;  %v669_v31 = vadd.f32 %v668_v28, %v667_v33  ;;  %v932_v44 = vsel %vm839_vm2, %v638_v7, %v931_v39  ;;  %v858_v48 = vrot.slane %v1702_v15, 6 }
  0xd0   : > { %v933_v42 = vsel %vm842_vm3, %v645_v24, %v932_v44  ;;  %v857_v13 = vsel %vm836_vm1, %v856_v37, %v1698_v30  ;;  %v860_v38 = vrot.slane %v1705_v34, 5  ;;  %v864_v40 = vrot.slane %v1709_v2, 3 }
  0xd1   : > { %v664_v3 = vadd.f32 %v663_v26, %v662_v19  ;;  %v670_v6 = vrot.slane %v669_v31, 2  ;;  %v934_v4 = vsel %vm845_vm4, %v652_v41, %v933_v42  ;;  %v859_v14 = vsel %vm839_vm2, %v858_v48, %v857_v13 }
  0xd2   : > { %v935_v56 = vsel %vm848_vm5, %v659_v32, %v934_v4  ;;  %v861_v15 = vsel %vm842_vm3, %v860_v38, %v859_v14  ;;  %v866_v43 = vrot.slane %v1712_v29, 2  ;;  %v1946_v49 = vrot.slane %v1714_v35, 1 }
  0xd3   : > { %v665_v22 = vrot.slane %v664_v3, 1  ;;  %v671_v60 = vadd.f32 %v670_v6, %v669_v31  ;;  %v863_v30 = vsel %vm845_vm4, %v533_v45, %v861_v15  ;;  %v835_v5 = vrot.slane %v1578_v47, 7 }
  0xd4   : > { %v865_v34 = vsel %vm848_vm5, %v864_v40, %v863_v30  ;;  %v838_v45 = vrot.slane %v1581_v51, 6  ;;  %v841_v35 = vrot.slane %v1584_v53, 5  ;;  %v847_v47 = vrot.slane %v1588_v55, 3 }
  0xd5   : > { %v666_v2 = vadd.f32 %v665_v22, %v664_v3  ;;  %v672_v21 = vrot.slane %v671_v60, 1  ;;  %v867_v61 = vsel %vm851_vm6, %v866_v43, %v865_v34  ;;  %v837_v50 = vsel %vm836_vm1, %v835_v5, %v1576_v46 }
  0xd6   : > { %v869_v12 = vsel %vm854_vm7, %v1946_v49, %v867_v61  ;;  %v840_v63 = vsel %vm839_vm2, %v838_v45, %v837_v50  ;;  %v1947_v10 = vrot.slane %v1586_v54, 4  ;;  %v850_v0 = vrot.slane %v1591_v58, 2 }
  0xd7   : > { %v673_v36 = vadd.f32 %v672_v21, %v671_v60  ;;  %v936_v62 = vsel %vm851_vm6, %v666_v2, %v935_v56  ;;  %v843_v9 = vsel %vm842_vm3, %v841_v35, %v840_v63  ;;  %v1948_v53 = vrot.slane %v1593_v59, 1 }
  0xd8   : > { %v846_v51 = vsel %vm845_vm4, %v1947_v10, %v843_v9 }
  0xd9   : > { %v937_v29 = vsel %vm854_vm7, %v673_v36, %v936_v62  ;;  %v849_v46 = vsel %vm848_vm5, %v847_v47, %v846_v51 }
  0xe2   : > { %v971_v1 = vpop.permute.xlu1 %970 }
  0xe3   : > { %v979_v57 = vsel %vm976_vm11, %v930_v52, %v971_v1  ;;  %v852_v52 = vsel %vm851_vm6, %v850_v0, %v849_v46 }
  0xe4   : > { %982 = vst [vmem:[%s203_s6 + $0x8] sm:$0xff] %v979_v57  ;;  %v855_v27 = vsel %vm854_vm7, %v1948_v53, %v852_v52 }
  0xf6   : > { %v903_v20 = vpop.permute.xlu0 %902 }
  0xf7   : > { %v977_v23 = vsel %vm976_vm11, %v855_v27, %v903_v20 }
  0xf8   : > { %981 = vst [vmem:[%s203_s6] sm:$0xff] %v977_v23 }
 0x10a   : > { %v973_v55 = vpop.permute.xlu1 %972 }
 0x10b   : > { %v980_v54 = vsel %vm976_vm11, %v937_v29, %v973_v55 }
 0x10c   : > { %984 = vst [vmem:[%s203_s6 + $0x18] sm:$0xff] %v980_v54 }
 0x11f   : > { %v905_v58 = vpop.permute.xlu0 %904 }
 0x120   : > { %v978_v59 = vsel %vm976_vm11, %v869_v12, %v905_v58 }
 0x121   : > { %983 = vst [vmem:[%s203_s6 + $0x10] sm:$0xff] %v978_v59 }
 0x122   : > { %1252 = shalt.err (!%p1249_p11)
}
 0x123   : > { %s1253_s16 = scalar_lea.hbm %s1879_s26, 512  ;;  %s1257_s3 = scalar_lea.hbm %s1926_s2, 1024 }
 0x124   : > { %p1254_p3 = scmp.ne.s32.totalorder %s1879_s26, %s1253_s16  ;;  %p1258_p2 = scmp.lt.u32.totalorder %s1879_s26, %s1926_s2 }
 0x125   : > { %p1259_p4 = scmp.lt.u32.totalorder %s1257_s3, %s1253_s16  ;;  %p1261_p13 = scmp.lt.u32.totalorder %s1253_s16, %s1879_s26 }
 0x126   : > { %p1255_p8 = pnand %p1254_p3, %p1949_p1 }
 0x127   : > { %p1260_p6 = por %p1259_p4, %p1258_p2 }
 0x128   : > { %p1256_p0 = pneg %p1255_p8 }
 0x129   : > { %p1262_p12 = por %p1261_p13, %p1260_p6 }
 0x12b   : > { %p1263_p10 = pnand %p1262_p12, %p1256_p0 }
 0x12d   : > { %1266 = shalt.err (!%p1263_p10)
}
 0x12e   : > { %s1317_s20 = smov 256   ;;  %s1318_s5 = smov 16  }
 0x12f   : > { %1127 = dma.vmem_to_hbm [thread:$0]  (%p1949_p1), %s1874_s14, 512, %s1879_s26, %s986_s27, %s1317_s20, %s1317_s20, %s1318_s5  }
 0x130 PF: > { %s1015_s6 = sand.u32 1, %s1297_s9   ;;  %p1950_p5 = scmp.ne.s32.totalorder %s1934_s22, 0 }
 0x131   : > { %p1951_p7 = scmp.ge.s32.totalorder %s1309_s12, 2  ;;  %s1016_s17 = scalar_lea.sflag [#allocation4], %s1015_s6 }
 0x133   : > { %p1137_p9 = pnand %p1951_p7, %p1950_p5 }
 0x135   : > { %1292 = dma.done.wait (!%p1137_p9), %s1016_s17, 512  }
 0x136   : > { %1294 = vsyncadd (!%p1137_p9), %s1016_s17, 4294966784  ;;  %p18_p11 = scmp.ge.s32.totalorder %s1359_s15, 4   ;;  %s1952_s9 = smov %s1301_s10 }
 0x137   : > { %s1953_s10 = smov %s1305_s11  ;;  %s1954_s11 = smov %s1371_s18 }
 0x138   : > { %s1955_s12 = smov %s1359_s15  ;;  %20 = sbr.rel (!%p18_p11) target bundleno = 7 (0x7), region = 86 }
 0x13f   :  { %1021 = vsyncpa [#allocation3], 1 }
 0x140   :  { %1023 = vsyncpa [#allocation3 + $0x1], 1 }
 0x141   :  { %1024 = vsyncpa [#allocation6], 1 }
 0x142   :  { %1026 = vsyncpa [#allocation6 + $0x1], 1 }
 0x143   :  { %1027 = vsyncpa [#allocation4], 1 }
 0x144   :  { %1029 = vsyncpa [#allocation4 + $0x1], 1 }

</bundles_post_ra>
